<compile_context>
chip_gen: v5e
topology: v5e:2x2
jax: 0.10.0
libtpu: 0.0.40
codegen_flags: <defaults>
</compile_context>

<pallas_src>
import jax
import jax.numpy as jnp
from jax import lax
from jax.experimental import pallas as pl
from jax.experimental.pallas import tpu as pltpu


_LANE = 128
# Cross-generation budgets: v7x has 64 MiB physical VMEM (32 MiB scoped
# default), v6e 128/32, v5e 128/16. We keep working-set estimates <= 24 MiB
# and raise the scoped limit to 40 MiB explicitly.
_VMEM_LIMIT_BYTES = 40 * 1024 * 1024
_FUSED_VMEM_BUDGET = 24 * 1024 * 1024
_TWO_PASS_VMEM_BUDGET = 24 * 1024 * 1024
_TARGET_TILE_BYTES = 2 * 1024 * 1024  # ~2 MiB per (C, tn) input tile


def _round_up(v, m):
    return ((v + m - 1) // m) * m


# ---------------------------------------------------------------------------
# Fused single-pass kernel (per-batch slab resident in VMEM).
# ---------------------------------------------------------------------------
def _fused_kernel(beta_ref, x_ref, o_ref):
    # beta_ref: SMEM (1,); x_ref / o_ref: (C, Npad) in the input's native dtype.
    xt = x_ref[...]
    gram = lax.dot_general(
        xt, xt,
        dimension_numbers=(((1,), (1,)), ((), ())),   # x @ x^T without .T
        preferred_element_type=jnp.float32,
    )
    # softmax(rowmax - gram) == softmax(-gram); stabilize with rowmin.
    e = jnp.exp(jnp.min(gram, axis=-1, keepdims=True) - gram)
    att = (e * pl.reciprocal(jnp.sum(e, axis=-1, keepdims=True))).astype(xt.dtype)
    acc = lax.dot_general(
        att, xt,
        dimension_numbers=(((1,), (0,)), ((), ())),   # (C,C) @ (C,Npad)
        preferred_element_type=jnp.float32,
    )
    beta = beta_ref[0]
    # Single full-tile downcast; residual add in the native dtype.
    o_ref[...] = (beta * acc).astype(o_ref.dtype) + xt


# ---------------------------------------------------------------------------
# Two-pass fallback, pass 1: gram accumulated over N tiles + softmax(-gram).
# ---------------------------------------------------------------------------
def _gram_softmax_kernel(x_ref, att_ref, acc_ref):
    # x_ref: (C, TN) native dtype; att_ref: (C, C) in x.dtype (resident across
    # the reduction axis); acc_ref: (C, C) f32 VMEM scratch accumulator.
    k = pl.program_id(1)

    @pl.when(k == 0)
    def _():
        acc_ref[...] = jnp.zeros_like(acc_ref)

    xt = x_ref[...]  # native dtype; f32 accumulation comes from the MXU
    acc_ref[...] += lax.dot_general(
        xt, xt,
        dimension_numbers=(((1,), (1,)), ((), ())),
        preferred_element_type=jnp.float32,
    )

    @pl.when(k == pl.num_programs(1) - 1)
    def _():
        gram = acc_ref[...]
        e = jnp.exp(jnp.min(gram, axis=-1, keepdims=True) - gram)
        inv = pl.reciprocal(jnp.sum(e, axis=-1, keepdims=True))
        # Write attention already in x.dtype so pass 2 needs no per-tile cast.
        att_ref[...] = (e * inv).astype(att_ref.dtype)


# ---------------------------------------------------------------------------
# Two-pass fallback, pass 2: out_tile = beta * (att @ x_tile) + x_tile.
# ---------------------------------------------------------------------------
def _apply_attention_kernel(beta_ref, att_ref, x_ref, o_ref):
    # beta_ref: SMEM (1,); att_ref: (C, C) x.dtype (resident); x_ref/o_ref: (C, TN).
    xt = x_ref[...]
    acc = lax.dot_general(
        att_ref[...], xt,
        dimension_numbers=(((1,), (0,)), ((), ())),
        preferred_element_type=jnp.float32,
    )
    beta = beta_ref[0]
    o_ref[...] = (beta * acc).astype(o_ref.dtype) + xt


# ---------------------------------------------------------------------------
# Helpers: tile sizing / path selection / BlockSpec with optional Buffered(3).
# ---------------------------------------------------------------------------
def _fused_fits(C, n_pad, itemsize):
    # x (2 bufs) + out (2 bufs) + f32 matmul/epilogue temps + gram/att.
    need = 4 * C * n_pad * itemsize + 2 * C * n_pad * 4 + 3 * C * C * 4
    return need <= _FUSED_VMEM_BUDGET


def _pick_tn(C, n_pad, itemsize):
    # Byte-sized N tiles: ~2 MiB per (C, tn) input tile, multiple of 128,
    # shrunk until the pass-2 working set fits the cross-gen VMEM budget.
    tn = _round_up(max(_TARGET_TILE_BYTES // max(C * itemsize, 1), _LANE), _LANE)
    tn = min(tn, n_pad)

    def pass2_bytes(t):
        # x (3 bufs) + out (2 bufs) + f32 acc/epilogue temps + resident att.
        return 5 * C * t * itemsize + 2 * C * t * 4 + 2 * C * C * itemsize

    while tn > _LANE and pass2_bytes(tn) > _TWO_PASS_VMEM_BUDGET:
        tn -= _LANE
    return tn


def _x_tile_spec(C, tn, index_map):
    # Triple-buffer the streamed x tiles (DMA-bound kernel, short compute).
    try:
        return pl.BlockSpec((None, C, tn), index_map, pipeline_mode=pl.Buffered(3))
    except TypeError:
        return pl.BlockSpec((None, C, tn), index_map)


# ---------------------------------------------------------------------------
# Wrapper
# ---------------------------------------------------------------------------
def da_channel_attention(x, beta, *, force_two_pass=False, tn_override=None):
    """x: (B, C, H, W); beta: scalar parameter (torch init: zeros(1)).

    tn_override (testing only) must be a multiple of 128.
    """
    B, C, H, W = x.shape
    N = H * W
    itemsize = jnp.dtype(x.dtype).itemsize
    beta_arr = jnp.asarray(beta, jnp.float32).reshape(1)

    # Always pad N to a multiple of 128 so output tiles are lane-dense.
    n_pad128 = _round_up(N, _LANE)
    use_fused = (not force_two_pass) and _fused_fits(C, n_pad128, itemsize)

    x_flat = x.reshape(B, C, N)

    if use_fused:
        n_pad = n_pad128
        if n_pad != N:
            x_flat = jnp.pad(x_flat, ((0, 0), (0, 0), (0, n_pad - N)))

        out_flat = pl.pallas_call(
            _fused_kernel,
            out_shape=jax.ShapeDtypeStruct((B, C, n_pad), x.dtype),
            grid=(B,),
            in_specs=[
                pl.BlockSpec(memory_space=pltpu.SMEM),                 # beta
                pl.BlockSpec((None, C, n_pad), lambda b: (b, 0, 0)),   # x slab
            ],
            out_specs=pl.BlockSpec((None, C, n_pad), lambda b: (b, 0, 0)),
            compiler_params=pltpu.CompilerParams(
                dimension_semantics=("parallel",),
                vmem_limit_bytes=_VMEM_LIMIT_BYTES,
            ),
            cost_estimate=pl.CostEstimate(
                flops=4 * B * C * C * n_pad,
                transcendentals=B * C * C,
                bytes_accessed=2 * B * C * n_pad * itemsize,
            ),
        )(beta_arr, x_flat)
    else:
        tn = tn_override if tn_override is not None else _pick_tn(C, n_pad128, itemsize)
        tn = min(tn, n_pad128)
        n_pad = _round_up(N, tn)
        if n_pad != N:
            x_flat = jnp.pad(x_flat, ((0, 0), (0, 0), (0, n_pad - N)))
        n_tiles = n_pad // tn

        # ---- Pass 1: attention weights (B, C, C), written in x.dtype ----
        att = pl.pallas_call(
            _gram_softmax_kernel,
            out_shape=jax.ShapeDtypeStruct((B, C, C), x.dtype),
            grid=(B, n_tiles),
            in_specs=[
                _x_tile_spec(C, tn, lambda b, k: (b, 0, k)),
            ],
            out_specs=pl.BlockSpec((None, C, C), lambda b, k: (b, 0, 0)),
            scratch_shapes=[pltpu.VMEM((C, C), jnp.float32)],
            compiler_params=pltpu.CompilerParams(
                dimension_semantics=("parallel", "arbitrary"),
                vmem_limit_bytes=_VMEM_LIMIT_BYTES,
            ),
            cost_estimate=pl.CostEstimate(
                flops=2 * B * C * C * n_pad,
                transcendentals=B * C * C,
                bytes_accessed=B * C * n_pad * itemsize + B * C * C * itemsize,
            ),
        )(x_flat)

        # ---- Pass 2: beta * (att @ x) + x, tiled over N (fully parallel) ----
        out_flat = pl.pallas_call(
            _apply_attention_kernel,
            out_shape=jax.ShapeDtypeStruct((B, C, n_pad), x.dtype),
            grid=(B, n_tiles),
            in_specs=[
                pl.BlockSpec(memory_space=pltpu.SMEM),                  # beta
                pl.BlockSpec((None, C, C), lambda b, j: (b, 0, 0)),     # att (resident)
                _x_tile_spec(C, tn, lambda b, j: (b, 0, j)),            # x tile
            ],
            out_specs=pl.BlockSpec((None, C, tn), lambda b, j: (b, 0, j)),
            compiler_params=pltpu.CompilerParams(
                dimension_semantics=("parallel", "parallel"),
                vmem_limit_bytes=_VMEM_LIMIT_BYTES,
            ),
            cost_estimate=pl.CostEstimate(
                flops=2 * B * C * C * n_pad,
                transcendentals=0,
                bytes_accessed=2 * B * C * n_pad * itemsize + B * C * C * itemsize,
            ),
        )(beta_arr, att, x_flat)

    if n_pad != N:
        out_flat = out_flat[:, :, :N]
    return out_flat.reshape(B, C, H, W)


# ---------------------------------------------------------------------------
# Pure-JAX reference mirroring the PyTorch forward, for verification.
# ---------------------------------------------------------------------------
def _reference(x, beta):
    B, C, H, W = x.shape
    xf = x.reshape(B, C, H * W).astype(jnp.float32)
    gram = jnp.einsum("bcn,bdn->bcd", xf, xf)
    att = jnp.max(gram, axis=-1, keepdims=True) - gram
    att = jax.nn.softmax(att, axis=-1)
    out = jnp.einsum("bcd,bdn->bcn", att, xf).reshape(B, C, H, W)
    return (beta * out + x.astype(jnp.float32)).astype(x.dtype)


if __name__ == "__main__":
    key = jax.random.PRNGKey(0)
    B, C, H, W = 2, 4, 16, 16
    x = jax.random.normal(key, (B, C, H, W), dtype=jnp.float32)

    # Module __init__: self.beta = nn.Parameter(torch.zeros(1))
    beta0 = jnp.zeros((1,), dtype=jnp.float32)
    beta1 = jnp.full((1,), 0.5, dtype=jnp.float32)

    # Fused single-pass path (per-batch slab fits VMEM).
    y = da_channel_attention(x, beta0)
    jax.block_until_ready(y)
    assert jnp.allclose(y, _reference(x, beta0[0]), atol=1e-5, rtol=1e-5)

    y = da_channel_attention(x, beta1)
    jax.block_until_ready(y)
    assert jnp.allclose(y, _reference(x, beta1[0]), atol=1e-4, rtol=1e-4)

    # Two-pass fallback path (tiled N reduction + apply), forced at small shape.
    y2 = da_channel_attention(x, beta1, force_two_pass=True, tn_override=128)
    jax.block_until_ready(y2)
    assert jnp.allclose(y2, _reference(x, beta1[0]), atol=1e-4, rtol=1e-4)

    # bf16 smoke test: gram is computed bf16 x bf16 -> f32 on the MXU (the
    # reference upcasts first); exp() amplifies that tiny difference, so only
    # check shape/finiteness here (documented trade-off).
    xb = x.astype(jnp.bfloat16)
    yb = da_channel_attention(xb, beta1)
    jax.block_until_ready(yb)
    assert yb.shape == x.shape
    assert bool(jnp.all(jnp.isfinite(yb.astype(jnp.float32))))

    print("KERNEL_OK")
</pallas_src>

<mosaic_0001>
module attributes {stable_mosaic.version = 11 : i64} {
  func.func @_fused_kernel(%arg0: i32, %arg1: memref<1xf32, #tpu.memory_space<smem>>, %arg2: memref<1x4x256xf32, #tpu.memory_space<vmem>>, %arg3: memref<1x4x256xf32, #tpu.memory_space<vmem>>) attributes {dimension_semantics = [#tpu.dimension_semantics<parallel>], iteration_bounds = array<i64: 2>, scalar_prefetch = 0 : i64, scratch_operands = 0 : i64, tpu.core_type = #tpu.core_type<tc>, window_params = [{transform_indices = @transform_0, window_bounds = array<i64: 1>}, {transform_indices = @transform_1, window_bounds = array<i64: 1, 4, 256>}, {transform_indices = @transform_2, window_bounds = array<i64: 1, 4, 256>}]} {
    %c0 = arith.constant 0 : index
    %c0_0 = arith.constant 0 : index
    %c0_1 = arith.constant 0 : index
    %0 = vector.load %arg2[%c0, %c0_0, %c0_1] : memref<1x4x256xf32, #tpu.memory_space<vmem>>, vector<1x4x256xf32>
    %1 = vector.shape_cast %0 : vector<1x4x256xf32> to vector<4x256xf32>
    %cst = arith.constant dense<0.000000e+00> : vector<4x4xf32>
    %2 = tpu.matmul %1, %1, %cst {dimension_numbers = #tpu.dot_dimension_numbers<[1], [1], [0], [0], [0, 0, 1, 0], [], []>} : vector<4x256xf32>, vector<4x256xf32>, vector<4x4xf32> -> vector<4x4xf32>
    %cst_2 = arith.constant dense<0x7F800000> : vector<4xf32>
    %3 = vector.multi_reduction <minimumf>, %2, %cst_2 [1] : vector<4x4xf32> to vector<4xf32>
    %4 = vector.shape_cast %3 : vector<4xf32> to vector<4x1xf32>
    %5 = vector.broadcast %4 : vector<4x1xf32> to vector<4x4xf32>
    %6 = arith.subf %5, %2 : vector<4x4xf32>
    %7 = math.exp %6 : vector<4x4xf32>
    %cst_3 = arith.constant dense<0.000000e+00> : vector<4xf32>
    %8 = vector.multi_reduction <add>, %7, %cst_3 [1] : vector<4x4xf32> to vector<4xf32>
    %9 = vector.shape_cast %8 : vector<4xf32> to vector<4x1xf32>
    %10 = tpu.reciprocal %9 : vector<4x1xf32> -> vector<4x1xf32>
    %11 = vector.broadcast %10 : vector<4x1xf32> to vector<4x4xf32>
    %12 = arith.mulf %7, %11 : vector<4x4xf32>
    %cst_4 = arith.constant dense<0.000000e+00> : vector<4x256xf32>
    %13 = tpu.matmul %12, %1, %cst_4 {dimension_numbers = #tpu.dot_dimension_numbers<[1], [0], [0], [1], [0, 0, 1, 1], [], []>} : vector<4x4xf32>, vector<4x256xf32>, vector<4x256xf32> -> vector<4x256xf32>
    %c0_5 = arith.constant 0 : index
    %14 = memref.load %arg1[%c0_5] : memref<1xf32, #tpu.memory_space<smem>>
    %15 = vector.broadcast %14 : f32 to vector<4x256xf32>
    %16 = arith.mulf %15, %13 : vector<4x256xf32>
    %17 = arith.addf %16, %1 : vector<4x256xf32>
    %c0_6 = arith.constant 0 : index
    %c0_7 = arith.constant 0 : index
    %c0_8 = arith.constant 0 : index
    %18 = vector.load %arg3[%c0_6, %c0_7, %c0_8] : memref<1x4x256xf32, #tpu.memory_space<vmem>>, vector<1x4x256xf32>
    %19 = vector.shape_cast %18 : vector<1x4x256xf32> to vector<4x256xf32>
    %20 = vector.shape_cast %17 : vector<4x256xf32> to vector<1x4x256xf32>
    tpu.vector_store %arg3[%c0_6, %c0_7, %c0_8], %20 {strides = array<i32>} : memref<1x4x256xf32, #tpu.memory_space<vmem>>, vector<1x4x256xf32>,
    return
  }
  func.func @transform_0(%arg0: i32) -> i32 {
    %c0_i32 = arith.constant 0 : i32
    %c0_i32_0 = arith.constant 0 : i32
    return %c0_i32 : i32
  }
  func.func @transform_1(%arg0: i32) -> (i32, i32, i32) {
    %c0_i32 = arith.constant 0 : i32
    %c0_i32_0 = arith.constant 0 : i32
    %c0_i32_1 = arith.constant 0 : i32
    return %arg0, %c0_i32, %c0_i32_0 : i32, i32, i32
  }
  func.func @transform_2(%arg0: i32) -> (i32, i32, i32) {
    %c0_i32 = arith.constant 0 : i32
    %c0_i32_0 = arith.constant 0 : i32
    %c0_i32_1 = arith.constant 0 : i32
    return %arg0, %c0_i32, %c0_i32_0 : i32, i32, i32
  }
}

</mosaic_0001>

<bundles_post_ra>
// kernel: tpu_custom_call.1
= control target key start
LH: loop header
LB: loop body
LE: loop exit
PB: predicated region body
PF: predicated region fallthrough
CT: control target
= control target key end

     0   :  { %s716_s0 = inlined_call_operand.<no memory space> [shape: f32[1], index: 0, kind: input, shape index: {}]   ;;  %s717_s1 = inlined_call_operand.hbm [shape: f32[2,4,256], index: 1, kind: input, shape index: {}]   ;;  %s718_s2 = inlined_call_operand.hbm [shape: f32[2,4,256], index: 2, kind: output, shape index: {}]  }
   0x1   :  { %7 = sst [smem:[#allocation2]] %s716_s0 }
   0x2   :  { %8 = vsyncpa [#allocation4], 0 }
   0x3   :  { %10 = vsyncpa [#allocation4 + $0x1], 0 }
   0x4   :  { %11 = vsyncpa [#allocation5], 0 }
   0x5   :  { %13 = vsyncpa [#allocation5 + $0x1], 0  ;;  %s582_s11 = smov 0   ;;  %s584_s12 = smov 0  }
   0x6   :  { %s586_s13 = smov 0   ;;  %s588_s14 = smov 0  }
   0x7 LB: > { %s603_s0 = sadd.s32 4294967295, %s562_s14   ;;  %s396_s15 = sadd.s32 4294967294, %s562_s14   ;;  %s562_s14 = sphi %s588_s14, %s728_s14   ;;  %s558_s13 = sphi %s586_s13, %s727_s13   ;;  %s554_s12 = sphi %s584_s12, %s726_s12   ;;  %s550_s11 = sphi %s582_s11, %s725_s11  }
   0x8   : > { %s607_s16 = sadd.s32 1, %s562_s14   ;;  %s47_s17 = sadd.s32 1, %s558_s13 }
   0x9   : > { %s44_s18 = ssub.s32 %s562_s14, %s607_s16  ;;  %p54_p0 = scmp.ne.s32.totalorder %s558_s13, %s554_s12 }
   0xa   : > { %p45_p1 = scmp.eq.s32.totalorder %s44_s18, 0  ;;  %p55_p2 = scmp.eq.s32.totalorder %s562_s14, 0 }
   0xb   : > { %p60_p3 = scmp.ne.s32.totalorder %s554_s12, %s550_s11  ;;  %p61_p4 = scmp.eq.s32.totalorder %s603_s0, 0 }
   0xc   : > { %s619_s19 = scalar_select %p45_p1, %s558_s13, %s47_s17  }
   0xd   : > { %p621_p5 = por %p55_p2, %p54_p0  ;;  %p625_p6 = por %p61_p4, %p60_p3 }
   0xe   : > { %p84_p7 = scmp.eq.s32.totalorder %s603_s0, 1  ;;  %p90_p8 = scmp.eq.s32.totalorder %s396_s15, 1 }
   0xf   : > { %p428_p10 = scmp.lt.s32.totalorder %s562_s14, 2  ;;  %s113_s24 = sand.u32 1, %s558_s13  }
  0x10   : > { %p632_p11 = por %p84_p7, %p54_p0  ;;  %p636_p12 = por %p90_p8, %p60_p3 }
  0x11   : > { %s414_s25 = sshll.u32 %s562_s14, 3  ;;  %s399_s26 = sshll.u32 %s113_s24, 3 }
  0x12   : > { %s122_s29 = scalar_lea.hbm %s717_s1, %s414_s25  ;;  %s117_s3 = scalar_lea.vmem [#allocation3], %s399_s26 }
  0x13   : > { %s124_s30 = sshll.u32 %s122_s29, 4  ;;  %s126_s4 = sshll.u32 %s117_s3, 4  ;;  %s125_s30 = int_to_ptr.hbm [resolvable:$true] %s124_s30  ;;  %s127_s4 = int_to_ptr.vmem [resolvable:$true] %s126_s4 }
  0x14   : > { %p647_p13 = pnand %p428_p10, %p621_p5  ;;  %p402_p0 = scmp.ge.s32.totalorder %s562_s14, 1 }
  0x15   : > { %p131_p1 = scmp.lt.s32.totalorder %s562_s14, 3  ;;  %s114_s6 = scalar_lea.sflag [#allocation4], %s113_s24 }
  0x16   : > { %s466_s7 = sshra.s32 %s125_s30, 4  ;;  %p470_p3 = pneg %p647_p13  ;;  %s467_s7 = int_to_ptr.hbm [resolvable:$true] %s466_s7 }
  0x17   : > { %s468_s8 = scalar_lea.hbm %s467_s7, 8  ;;  %s473_s15 = scalar_lea.hbm %s717_s1, 16 }
  0x18   : > { %p469_p2 = scmp.ne.s32.totalorder %s467_s7, %s468_s8  ;;  %p474_p5 = scmp.lt.s32.totalorder %s467_s7, %s717_s1 }
  0x19   : > { %p475_p8 = scmp.lt.s32.totalorder %s473_s15, %s468_s8 }
  0x1a   : > { %p471_p4 = pnand %p470_p3, %p469_p2 }
  0x1b   : > { %p476_p10 = por %p475_p8, %p474_p5 }
  0x1c   : > { %p472_p7 = pneg %p471_p4 }
  0x1e   : > { %p477_p9 = pnand %p476_p10, %p472_p7 }
  0x20   : > { %480 = shalt.err (!%p477_p9)
}
  0x21   : > { %423 = dma.hbm_to_vmem [thread:$0]  (!%p647_p13), %s125_s30, 128, %s127_s4, %s114_s6  }
  0x22   : > { %p132_p2 = pnand %p402_p0, %p131_p1 }
  0x23   : > { %s668_s20 = sand.u32 (!%p132_p2), 1, %s554_s12  }
  0x24   : > { %135 = sbr.rel (%p132_p2) target bundleno = 596 (0x254), region = 28  ;;  %s403_s24 = sshll.u32 (!%p132_p2), %s668_s20, 3 }
  0x25   : > { %s138_s25 = scalar_lea.sflag (!%p132_p2), [#allocation4], %s668_s20  ;;  %s141_s26 = scalar_lea.vmem (!%p132_p2), [#allocation3], %s403_s24 }
  0x29   : > { %541 = dma.done.wait (%p625_p6), %s138_s25, 128  }
  0x2a   : > { %543 = vsyncadd (%p625_p6), %s138_s25, 4294967168  ;;  %v163_v0 = vld [vmem:[%s141_s26] sm:$0xff]  ;;  %vm215_vm0 = vcmask 27648   ;;  %vm247_vm1 = vcmask 1043456   ;;  %vm243_vm6 = vcmask 31744   ;;  %s292_s21 = sld [smem:[#allocation2]] }
  0x2b   : > { %165 = vst [vmem:[#allocation1] ss:$2 sm:$0xff] %v163_v0  ;;  %s415_s27 = sshll.u32 %s603_s0, 3  ;;  %s162_s3 = scalar_lea.vmem [#allocation6], %s403_s24 }
  0x2c   : > { %s321_s30 = scalar_lea.hbm %s718_s2, %s415_s27  ;;  %s323_s4 = sshll.u32 %s162_s3, 4  ;;  %s324_s4 = int_to_ptr.vmem [resolvable:$true] %s323_s4 }
  0x2d   : > { %s325_s5 = sshll.u32 %s321_s30, 4  ;;  %s310_s0 = scalar_lea.sflag [#allocation5], %s668_s20  ;;  %s326_s5 = int_to_ptr.hbm [resolvable:$true] %s325_s5 }
  0x2e   : > { %s510_s6 = sshra.s32 %s326_s5, 4  ;;  %s516_s10 = scalar_lea.hbm %s718_s2, 16  ;;  %s511_s6 = int_to_ptr.hbm [resolvable:$true] %s510_s6 }
  0x2f   : > { %s512_s7 = scalar_lea.hbm %s511_s6, 8  ;;  %p517_p0 = scmp.lt.s32.totalorder %s511_s6, %s718_s2 }
  0x30   : > { %v293_v28 = vstv %s292_s21  ;;  %p513_p6 = scmp.ne.s32.totalorder %s511_s6, %s512_s7  ;;  %p518_p1 = scmp.lt.s32.totalorder %s516_s10, %s512_s7 }
  0x32   : > { %v166_v1 = vld.sshfl [vmem:[#allocation1] sm:$0xff pattern:$0x75316420]  ;;  %v167_v2 = vld.sshfl [vmem:[#allocation1 + $0x8] sm:$0xff pattern:$0x75316420]  ;;  %p514_p9 = pnand %p513_p6, %p632_p11  ;;  %p519_p3 = por %p518_p1, %p517_p0 }
  0x33   : > { %170 = vst [vmem:[#allocation1] ss:$2 sm:$0xff] %v163_v0 }
  0x34   : > { %p515_p13 = pneg %p514_p9 }
  0x36   : > { %p520_p4 = pnand %p519_p3, %p515_p13 }
  0x3a   : > { %v171_v3 = vld.sshfl [vmem:[#allocation1] sm:$0xff pattern:$0x75316420]  ;;  %v172_v4 = vld.sshfl [vmem:[#allocation1 + $0x8] sm:$0xff pattern:$0x75316420] }
  0x3b   : > { %190 = vmatpush.xpose.msra.mxu0 %v171_v3  ;;  %210 = vmatpush.xpose.msra.mxu1 %v172_v4  ;;  %240 = vst [vmem:[#allocation1] ss:$2 sm:$0xff] %v163_v0 }
  0x3e   : > { %191 = vmatmul.f32.vlgmr.msra.gmra.mxu0 %v166_v1  ;;  %211 = vmatmul.f32.vlgmr.msra.gmra.mxu1 %v167_v2 }
  0x42   : > { %v241_v14 = vld.sshfl [vmem:[#allocation1] sm:$0xff pattern:$0x75316420]  ;;  %v242_v15 = vld.sshfl [vmem:[#allocation1 + $0x8] sm:$0xff pattern:$0x75316420] }
  0x43   : > { %405 = vmatpush.msk.msra.mxu2 %vm247_vm1, %v241_v14  ;;  %407 = vmatpush.msk.msra.mxu3 %vm247_vm1, %v242_v15  ;;  %296 = vst [vmem:[#allocation1] ss:$2 sm:$0xff] %v163_v0 }
  0x4a   : > { %v298_v31 = vld.sshfl [vmem:[#allocation1 + $0x8] sm:$0xff pattern:$0x75316420]  ;;  %v297_v34 = vld.sshfl [vmem:[#allocation1] sm:$0xff pattern:$0x75316420] }
  0xbb   : > { %v192_v5 = vpop.f32.mrf.mxu0  ;;  %v212_v6 = vpop.f32.mrf.mxu1 }
  0xbc   : > { %v213_v7 = vadd.f32 %v212_v6, %v192_v5 }
  0xbe   : > { %v216_v8 = vsel %vm215_vm0, %v213_v7, inf }
  0xbf   : > { %217 = vmin.xlane.f32.xlu0 %v216_v8 }
 0x132   : > { %v218_v9 = vpop.xlane.xlu0 %217 }
 0x133   : > { %v219_v10 = vsub.f32 %v218_v9, %v213_v7 }
 0x135   : > { %v220_v11 = vmul.f32 1.442695, %v219_v10 }
 0x137   : > { %462 = vpow2.f32 %v220_v11 }
 0x13d   : > { %v463_v12 = vpop.eup %462 }
 0x13e   : > { %v222_v13 = vsel %vm215_vm0, %v463_v12, 0.0 }
 0x13f   : > { %223 = vadd.xlane.f32.xlu0 %v222_v13 }
 0x1b2   : > { %v224_v16 = vpop.xlane.xlu0 %223 }
 0x1b3   : > { %464 = vrcp.f32 %v224_v16  ;;  %v236_v20 = vand.u32 2147483648, %v224_v16  ;;  %v234_v22 = vand.u32 2147483647, %v224_v16  ;;  %vm230_vm3 = vweird.f32 %v224_v16 }
 0x1b5   : > { %v237_v24 = vor.u32 1.1754944e-38, %v236_v20  ;;  %vm235_vm5 = vcmp.eq.f32.partialorder %v234_v22, 8.507059e+37 }
 0x1b9   : > { %v465_v17 = vpop.eup %464 }
 0x1ba   : > { %v226_v18 = vmul.f32 %v465_v17, %v224_v16  ;;  %vm231_vm2 = vweird.f32 %v465_v17 }
 0x1bb   : > { %vm232_vm4 = vmor %vm230_vm3, %vm231_vm2 }
 0x1bc   : > { %v227_v19 = vsub.f32 1.0, %v226_v18 }
 0x1be   : > { %v228_v21 = vmul.f32 %v465_v17, %v227_v19 }
 0x1c0   : > { %v229_v23 = vadd.f32 %v465_v17, %v228_v21 }
 0x1c2   : > { %v233_v25 = vsel %vm232_vm4, %v465_v17, %v229_v23 }
 0x1c3   : > { %v238_v26 = vsel %vm235_vm5, %v237_v24, %v233_v25 }
 0x1c4   : > { %v239_v27 = vmul.f32 %v463_v12, %v238_v26 }
 0x1c6   : > { %406 = vmatmul.msk.f32.vlgmr.msra.gmra.mxu2 %vm243_vm6, %v239_v27  ;;  %408 = vmatmul.msk.f32.vlgmr.msra.gmra.mxu3 %vm243_vm6, %v239_v27 }
 0x249   : > { %v269_v29 = vpop.f32.mrf.mxu2  ;;  %v289_v30 = vpop.f32.mrf.mxu3 }
 0x24a   : > { %v294_v32 = vmul.f32 %v293_v28, %v269_v29  ;;  %v295_v33 = vmul.f32 %v293_v28, %v289_v30 }
 0x24c   : > { %v302_v35 = vadd.f32 %v298_v31, %v295_v33  ;;  %v301_v36 = vadd.f32 %v297_v34, %v294_v32 }
 0x24e   : > { %v305_v37 = vrot.slane %v302_v35, 4 }
 0x250   : > { %v306_v38 = vsel %vm247_vm1, %v301_v36, %v305_v37 }
 0x251   : > { %308 = vst [vmem:[%s162_s3] sm:$0xff] %v306_v38 }
 0x252   : > { %523 = shalt.err (!%p520_p4)
}
 0x253   : > { %418 = dma.vmem_to_hbm [thread:$0]  (%p632_p11), %s324_s4, 128, %s326_s5, %s310_s0  }
 0x254 PF: > { %s337_s18 = sand.u32 1, %s550_s11   ;;  %p724_p7 = scmp.ge.s32.totalorder %s562_s14, 2 }
 0x255   : > { %s338_s20 = scalar_lea.sflag [#allocation5], %s337_s18 }
 0x256   : > { %p425_p5 = pnand %p724_p7, %p636_p12 }
 0x258   : > { %p426_p8 = pneg %p425_p5 }
 0x25a   : > { %545 = dma.done.wait (%p426_p8), %s338_s20, 128  }
 0x25b   : > { %547 = vsyncadd (%p426_p8), %s338_s20, 4294967168  ;;  %p16_p10 = scmp.ge.s32.totalorder %s607_s16, 4   ;;  %s725_s11 = smov %s554_s12 }
 0x25c   : > { %s726_s12 = smov %s558_s13  ;;  %s727_s13 = smov %s619_s19 }
 0x25d   : > { %s728_s14 = smov %s607_s16  ;;  %18 = sbr.rel (!%p16_p10) target bundleno = 7 (0x7), region = 73 }
 0x262   :  { %344 = vsyncpa [#allocation4], 1 }
 0x263   :  { %346 = vsyncpa [#allocation4 + $0x1], 1 }
 0x264   :  { %347 = vsyncpa [#allocation5], 1 }
 0x265   :  { %349 = vsyncpa [#allocation5 + $0x1], 1 }

</bundles_post_ra>
